<compile_context>
chip_gen: v6e
topology: v6e:2x2x1
jax: 0.10.0
libtpu: 0.0.40
codegen_flags: <defaults>
</compile_context>

<pallas_src>
import jax
import jax.numpy as jnp
from jax.experimental import pallas as pl
from jax.experimental.pallas import tpu as pltpu


_LANE = 128                      # minor-dim alignment (lanes)
_SUBLANE = 8                     # second-minor alignment (f32 sublanes)
_LANE_CAP = 512                  # preferred max tile along lane-constrained axes
_SUBLANE_CAP = 256               # preferred max tile along sublane-constrained axes
_BLOCK_BUDGET_BYTES = 4 << 20    # ~4 MiB per live block buffer (4 buffers live)


def _pick_tile(dim, align, cap):
    """Largest tile <= cap that is a multiple of `align` and divides `dim`.

    Falls back to the full extent (always a legal block) when `dim` is not
    divisible by `align`.
    """
    if dim % align != 0:
        return dim
    t = min(cap, dim)
    t -= t % align
    while dim % t != 0:
        t -= align
    return t


def pallas_transpose(x, order):
    """Pallas equivalent of torch `x.permute(order)` (order includes batch dim)."""
    order = tuple(int(o) for o in order)
    n = x.ndim
    assert sorted(order) == list(range(n)), "order must be a permutation of dims"
    in_shape = tuple(x.shape)
    out_shape = tuple(in_shape[q] for q in order)
    itemsize = x.dtype.itemsize

    if n < 2:
        # 0-D / 1-D: trivial copy, whole array as a single block.
        def copy_kernel(x_ref, o_ref):
            o_ref[...] = x_ref[...]

        return pl.pallas_call(
            copy_kernel,
            out_shape=jax.ShapeDtypeStruct(out_shape, x.dtype),
        )(x)

    nm2, nm1 = n - 2, n - 1
    a, b = order[-2], order[-1]       # input axes that become the last two output axes
    S = sorted({nm2, nm1, a, b})      # resident axes: keep input AND output blocks
                                      # (8,128)-legal and the output lane-dense
    in_S = [k in S for k in range(n)]

    # ---- tile sizes for resident axes ---------------------------------------
    tiles = {}
    for s in S:
        # minor (lane) constraint if the axis is the input minor dim or the
        # output minor dim; otherwise second-minor (sublane) constraint.
        if s == nm1 or s == b:
            tiles[s] = _pick_tile(in_shape[s], _LANE, _LANE_CAP)
        else:
            tiles[s] = _pick_tile(in_shape[s], _SUBLANE, _SUBLANE_CAP)

    def _block_bytes():
        e = 1
        for s in S:
            e *= tiles[s]
        return e * itemsize

    # Shrink toward the per-buffer budget (input + output each double-buffered).
    while _block_bytes() > _BLOCK_BUDGET_BYTES:
        cand = None
        for s in S:
            align = _LANE if (s == nm1 or s == b) else _SUBLANE
            if tiles[s] % (2 * align) == 0 and (cand is None or tiles[s] > tiles[cand]):
                cand = s
        if cand is None:
            # TODO(synk): huge non-aligned resident dims cannot be tiled legally;
            # rely on vmem_limit_bytes below (best effort).
            break
        tiles[cand] //= 2

    eff = [tiles[k] if in_S[k] else 1 for k in range(n)]

    # ---- grid: one axis per tensor dim, ordered output-major -----------------
    grid = tuple(in_shape[order[p]] // eff[order[p]] for p in range(n))

    inv = [0] * n                      # inv[input_axis] = output position / grid axis
    for p, q in enumerate(order):
        inv[q] = p

    def in_index_map(*g):
        return tuple(g[inv[k]] for k in range(n))

    def out_index_map(*g):
        return tuple(g)

    in_block = tuple(tiles[k] if in_S[k] else pl.Squeezed() for k in range(n))
    out_block = tuple(
        tiles[order[p]] if in_S[order[p]] else pl.Squeezed() for p in range(n)
    )

    # ---- in-kernel permutation of the (small, aligned) resident tile ---------
    restricted = [q for q in order if in_S[q]]
    perm = tuple(S.index(q) for q in restricted)

    if perm == tuple(range(len(perm))):
        # Relative order of resident axes unchanged: permutation is carried
        # entirely by the index maps -> pure DMA copy kernel.
        def kernel(x_ref, o_ref):
            o_ref[...] = x_ref[...]
    else:
        def kernel(x_ref, o_ref):
            # XLU transpose of a lane/sublane-aligned VMEM tile.
            o_ref[...] = jnp.transpose(x_ref[...], perm)

    block_bytes = _block_bytes()
    vmem_limit = int(min(64 << 20, max(16 << 20, 6 * block_bytes + (4 << 20))))

    return pl.pallas_call(
        kernel,
        out_shape=jax.ShapeDtypeStruct(out_shape, x.dtype),
        grid_spec=pltpu.PrefetchScalarGridSpec(
            num_scalar_prefetch=0,
            grid=grid,
            in_specs=[pl.BlockSpec(in_block, in_index_map)],
            out_specs=pl.BlockSpec(out_block, out_index_map),
        ),
        compiler_params=pltpu.CompilerParams(
            dimension_semantics=("parallel",) * n,
            vmem_limit_bytes=vmem_limit,
        ),
        cost_estimate=pl.CostEstimate(
            flops=0,
            transcendentals=0,
            bytes_accessed=int(2 * x.size * itemsize),
        ),
    )(x)


class PallasTranspose:
    """Drop-in functional equivalent of the PyTorch Transpose module."""

    def __init__(self, order):
        self.order = tuple(int(o) for o in order)

    def __call__(self, x):
        return pallas_transpose(x, self.order)


if __name__ == "__main__":
    key = jax.random.PRNGKey(0)

    # NCHW-style input.
    B, C, H, W = 2, 4, 16, 16
    x = jax.random.normal(key, (B, C, H, W), dtype=jnp.float32)

    cases = [
        (0, 2, 3, 1),  # NCHW -> NHWC: minor dim moves (in-kernel tile permute)
        (2, 0, 3, 1),  # batch axis moves too (carried by index maps)
        (1, 0, 2, 3),  # leading-axes swap: pure index-map copy kernel
    ]
    for order in cases:
        mod = PallasTranspose(order)
        out = jax.block_until_ready(mod(x))
        ref = jnp.transpose(x, order)
        assert out.shape == ref.shape, (order, out.shape, ref.shape)
        assert jnp.array_equal(out, ref), f"mismatch vs jnp.transpose for order={order}"

    print("KERNEL_OK")
</pallas_src>

<mosaic_0001>
module attributes {stable_mosaic.version = 11 : i64} {
  func.func @kernel(%arg0: i32, %arg1: i32, %arg2: i32, %arg3: i32, %arg4: memref<1x4x16x16xf32, #tpu.memory_space<vmem>>, %arg5: memref<1x16x16x4xf32, #tpu.memory_space<vmem>>) attributes {dimension_semantics = [#tpu.dimension_semantics<parallel>, #tpu.dimension_semantics<parallel>, #tpu.dimension_semantics<parallel>, #tpu.dimension_semantics<parallel>], iteration_bounds = array<i64: 2, 1, 1, 1>, scalar_prefetch = 0 : i64, scratch_operands = 0 : i64, tpu.core_type = #tpu.core_type<tc>, window_params = [{transform_indices = @transform_0, window_bounds = array<i64: 1, 4, 16, 16>}, {transform_indices = @transform_1, window_bounds = array<i64: 1, 16, 16, 4>}]} {
    %c0 = arith.constant 0 : index
    %c0_0 = arith.constant 0 : index
    %c0_1 = arith.constant 0 : index
    %c0_2 = arith.constant 0 : index
    %0 = vector.load %arg4[%c0, %c0_0, %c0_1, %c0_2] : memref<1x4x16x16xf32, #tpu.memory_space<vmem>>, vector<1x4x16x16xf32>
    %1 = vector.shape_cast %0 : vector<1x4x16x16xf32> to vector<4x16x16xf32>
    %2 = tpu.transpose %1, [1, 2, 0] : vector<4x16x16xf32> -> vector<16x16x4xf32>
    %c0_3 = arith.constant 0 : index
    %c0_4 = arith.constant 0 : index
    %c0_5 = arith.constant 0 : index
    %c0_6 = arith.constant 0 : index
    %3 = vector.load %arg5[%c0_3, %c0_4, %c0_5, %c0_6] : memref<1x16x16x4xf32, #tpu.memory_space<vmem>>, vector<1x16x16x4xf32>
    %4 = vector.shape_cast %3 : vector<1x16x16x4xf32> to vector<16x16x4xf32>
    %5 = vector.shape_cast %2 : vector<16x16x4xf32> to vector<1x16x16x4xf32>
    tpu.vector_store %arg5[%c0_3, %c0_4, %c0_5, %c0_6], %5 {strides = array<i32>} : memref<1x16x16x4xf32, #tpu.memory_space<vmem>>, vector<1x16x16x4xf32>,
    return
  }
  func.func @transform_0(%arg0: i32, %arg1: i32, %arg2: i32, %arg3: i32) -> (i32, i32, i32, i32) {
    %c0_i32 = arith.constant 0 : i32
    return %arg0, %arg3, %arg1, %arg2 : i32, i32, i32, i32
  }
  func.func @transform_1(%arg0: i32, %arg1: i32, %arg2: i32, %arg3: i32) -> (i32, i32, i32, i32) {
    %c0_i32 = arith.constant 0 : i32
    return %arg0, %arg1, %arg2, %arg3 : i32, i32, i32, i32
  }
}

</mosaic_0001>

<bundles_post_ra>
// kernel: tpu_custom_call.1
= control target key start
LH: loop header
LB: loop body
LE: loop exit
PB: predicated region body
PF: predicated region fallthrough
CT: control target
= control target key end

     0   :  { %6 = vsyncpa [#allocation3], 0  ;;  %s2137_s0 = inlined_call_operand.hbm [shape: f32[2,4,16,16], index: 0, kind: input, shape index: {}]   ;;  %s2138_s1 = inlined_call_operand.vmem [shape: f32[2,16,16,4], index: 1, kind: output, shape index: {}]  }
   0x1   :  { %8 = vsyncpa [#allocation3 + $0x1], 0  ;;  %s1874_s6 = smov 0   ;;  %s1876_s7 = smov 0  }
   0x2   :  { %s1878_s8 = smov 0   ;;  %s1880_s9 = smov 0  }
   0x3   :  { %s1882_s10 = smov 0   ;;  %s1884_s11 = smov 0  }
   0x4 LB: > { %s1703_s12 = sadd.s32 4294967295, %s1856_s11   ;;  %s40_s13 = sadd.s32 1, %s1852_s10  ;;  %s1856_s11 = sphi %s1884_s11, %s14_s11   ;;  %s1852_s10 = sphi %s1882_s10, %s2146_s10   ;;  %s1848_s9 = sphi %s1880_s9, %s2145_s9   ;;  %s1844_s8 = sphi %s1878_s8, %s2144_s8   ;;  %s1840_s7 = sphi %s1876_s7, %s2143_s7   ;;  %s1836_s6 = sphi %s1874_s6, %s2142_s6  }
   0x5   : > { %p42_p0 = scmp.ge.s32.totalorder %s40_s13, 2  ;;  %s53_s14 = sadd.s32 1, %s1844_s8 }
   0x6   : > { %p60_p1 = scmp.ne.s32.totalorder %s1844_s8, %s1840_s7  ;;  %p61_p2 = scmp.eq.s32.totalorder %s1856_s11, 0 }
   0x7   : > { %s2148_s13 = smov (%p42_p0, %s40_s13), 0  ;;  %p66_p4 = scmp.ne.s32.totalorder %s1840_s7, %s1836_s6 }
   0x8   : > { %p1910_p3 = por %p61_p2, %p60_p1  ;;  %s44_s16 = ssub.s32 %s1852_s10, %s2148_s13 }
   0x9   : > { %p67_p5 = scmp.eq.s32.totalorder %s1703_s12, 0  ;;  %p51_p6 = scmp.eq.s32.totalorder %s44_s16, 0 }
   0xa   : > { %p1724_p8 = scmp.lt.s32.totalorder %s1856_s11, 2  ;;  %s122_s19 = sand.u32 1, %s1844_s8  }
   0xb   : > { %p1917_p7 = por %p67_p5, %p66_p4  ;;  %s1716_s20 = sshll.u32 %s1852_s10, 10 }
   0xc   : > { %s1923_s18 = scalar_select %p51_p6, %s1844_s8, %s53_s14  }
   0xd   : > { %s1707_s21 = sshll.u32 %s122_s19, 6  ;;  %s138_s24 = scalar_lea.hbm %s2137_s0, %s1716_s20 }
   0xe   : > { %s126_s25 = scalar_lea.vmem [#allocation2], %s1707_s21  ;;  %p1932_p9 = pnand %p1724_p8, %p1910_p3 }
   0xf   : > { %s139_s26 = sshll.u32 %s126_s25, 4  ;;  %s123_s28 = scalar_lea.sflag [#allocation3], %s122_s19  ;;  %s140_s26 = int_to_ptr.vmem [resolvable:$true] %s139_s26 }
  0x10   : > { %p1780_p10 = pneg %p1932_p9  ;;  %s1791_s29 = scalar_lea.vmem %s140_s26, 1024 }
  0x11   : > { %p1792_p11 = scmp.ne.s32.totalorder %s140_s26, %s1791_s29  ;;  %s1858_s30 = smov [#allocation2]  }
  0x12   : > { %s1796_s2 = sshll.u32 %s1858_s30, 4  ;;  %s1797_s2 = int_to_ptr.vmem [resolvable:$false] %s1796_s2 }
  0x13   : > { %p1794_p12 = pnand %p1792_p11, %p1780_p10  ;;  %s1798_s3 = scalar_lea.vmem %s1797_s2, 2048 }
  0x14   : > { %p1799_p0 = scmp.lt.s32.totalorder %s140_s26, %s1797_s2  ;;  %p1800_p1 = scmp.lt.s32.totalorder %s1798_s3, %s1791_s29 }
  0x15   : > { %p1795_p13 = pneg %p1794_p12 }
  0x16   : > { %p1801_p2 = por %p1800_p1, %p1799_p0 }
  0x18   : > { %p1802_p3 = pnand %p1801_p2, %p1795_p13 }
  0x1a   : > { %1805 = shalt.err (!%p1802_p3)
}
  0x1b   : > { %s1859_s4 = smov 128   ;;  %s1860_s5 = smov 8  }
  0x1c   : > { %1723 = dma.hbm_to_vmem [thread:$0]  (!%p1932_p9), %s138_s24, 1024, %s140_s26, %s123_s28, %s1859_s4, %s1859_s4, %s1860_s5  }
  0x1d   : > { %p1710_p4 = scmp.ge.s32.totalorder %s1856_s11, 1  ;;  %p147_p5 = scmp.lt.s32.totalorder %s1856_s11, 3 }
  0x1f   : > { %p148_p6 = pnand %p1710_p4, %p147_p5 }
  0x20   : > { %s153_s6 = sand.u32 (!%p148_p6), 1, %s1840_s7  }
  0x21   : > { %151 = sbr.rel (%p148_p6) target bundleno = 384 (0x180), region = 24  ;;  %s1711_s12 = sshll.u32 (!%p148_p6), %s153_s6, 6 }
  0x22   : > { %s154_s14 = scalar_lea.sflag (!%p148_p6), [#allocation3], %s153_s6  ;;  %s157_s15 = scalar_lea.vmem (!%p148_p6), [#allocation2], %s1711_s12 }
  0x26   : > { %1831 = dma.done.wait (%p1917_p7), %s154_s14, 1024  }
  0x27   : > { %1833 = vsyncadd (%p1917_p7), %s154_s14, 4294966272  ;;  %v211_v0 = vld [vmem:[%s157_s15 + $0x10] sm:$0xff]  ;;  %v209_v1 = vld [vmem:[%s157_s15] sm:$0xff]  ;;  %v1861_v8 = vmov 1983009808   ;;  %v350_v10 = vlaneseq  ;;  %v1863_v35 = vmov 0.0  }
  0x28   : > { %249 = vxpose.xlu1.b32.start [1/2] (short) (narrow) %v211_v0, 16  ;;  %217 = vxpose.xlu0.b32.start [1/2] (short) (narrow) %v209_v1, 16  ;;  %v212_v2 = vld [vmem:[%s157_s15 + $0x18] sm:$0xff]  ;;  %v210_v3 = vld [vmem:[%s157_s15 + $0x8] sm:$0xff]  ;;  %v215_v4 = vld [vmem:[%s157_s15 + $0x30] sm:$0xff]  ;;  %v348_v9 = vunpack.c.l.s4 %v1861_v8  ;;  %p192_p7 = scmp.lt.s32.totalorder %s1848_s9, 1 }
  0x29   : > { %v213_v5 = vld [vmem:[%s157_s15 + $0x20] sm:$0xff]  ;;  %v216_v6 = vld [vmem:[%s157_s15 + $0x38] sm:$0xff]  ;;  %v214_v7 = vld [vmem:[%s157_s15 + $0x28] sm:$0xff]  ;;  %v351_v14 = vshrl.u32 %v350_v10, 7  ;;  %v1862_v17 = vmov 1934713408  }
  0x2a   : > { %v349_v13 = vunpack.c.0.s8 %v348_v9  ;;  %v380_v18 = vunpack.c.l.s4 %v1862_v17  ;;  %vm1537_vm0 = vcmask 31744   ;;  %s2150_s9 = smov (!%p192_p7, %s1848_s9), 1 }
  0x2b   : > { %s1717_s16 = sshll.u32 %s2150_s9, 8 }
  0x2c   : > { %250 = vxpose.xlu1.b32.end [2/2] (short) (narrow) %v212_v2, 16  ;;  %218 = vxpose.xlu0.b32.end [2/2] (short) (narrow) %v210_v3, 16  ;;  %v1947_v19 = vsub.s32 %v349_v13, %v351_v14  ;;  %v381_v22 = vunpack.c.0.s8 %v380_v18  ;;  %s2003_s19 = scalar_lea.vmem %s2138_s1, %s1717_s16 }
  0x2e   : > { %v1951_v29 = vsub.s32 %v381_v22, %v351_v14 }
  0x30   : > { %313 = vxpose.xlu1.b32.start [1/2] (short) (narrow) %v215_v4, 16  ;;  %281 = vxpose.xlu0.b32.start [1/2] (short) (narrow) %v213_v5, 16 }
  0x34   : > { %314 = vxpose.xlu1.b32.end [2/2] (short) (narrow) %v216_v6, 16  ;;  %282 = vxpose.xlu0.b32.end [2/2] (short) (narrow) %v214_v7, 16 }
  0xa4   : > { %v265_v11 = vpop.trf.xlu1  ;;  %v233_v12 = vpop.trf.xlu0 }
  0xa8   : > { %v266_v15 = vpop.trf.xlu1  ;;  %v234_v16 = vpop.trf.xlu0 }
  0xac   : > { %v329_v20 = vpop.trf.xlu1  ;;  %v297_v21 = vpop.trf.xlu0 }
  0xad   : > { %v361_v23 = vcombine.low %v265_v11, %v329_v20  ;;  %v345_v24 = vcombine.low %v233_v12, %v297_v21  ;;  %v362_v27 = vcombine.high %v265_v11, %v329_v20  ;;  %v346_v28 = vcombine.high %v233_v12, %v297_v21 }
  0xaf   : > { %v369_v25 = vrot.slane %v361_v23, %v1947_v19  ;;  %v353_v26 = vrot.slane %v345_v24, %v1947_v19  ;;  %v376_v32 = vrot.slane %v362_v27, %v1947_v19  ;;  %v360_v33 = vrot.slane %v346_v28, %v1947_v19 }
  0xb0   : > { %v330_v37 = vpop.trf.xlu1  ;;  %v298_v38 = vpop.trf.xlu0 }
  0xb1   : > { %v377_v30 = vcombine.low %v353_v26, %v369_v25  ;;  %v378_v31 = vcombine.high %v353_v26, %v369_v25  ;;  %v393_v40 = vcombine.low %v360_v33, %v376_v32  ;;  %v429_v41 = vcombine.low %v266_v15, %v330_v37 }
  0xb2   : > { %v413_v42 = vcombine.low %v234_v16, %v298_v38  ;;  %v394_v45 = vcombine.high %v360_v33, %v376_v32  ;;  %v430_v51 = vcombine.high %v266_v15, %v330_v37  ;;  %v414_v52 = vcombine.high %v234_v16, %v298_v38 }
  0xb3   : > { %v385_v34 = vrot.slane %v377_v30, %v1951_v29  ;;  %v392_v39 = vrot.slane %v378_v31, %v1951_v29  ;;  %v401_v44 = vrot.slane %v393_v40, %v1951_v29  ;;  %v437_v46 = vrot.slane %v429_v41, %v1947_v19 }
  0xb4   : > { %v421_v47 = vrot.slane %v413_v42, %v1947_v19  ;;  %v408_v49 = vrot.slane %v394_v45, %v1951_v29  ;;  %v444_v56 = vrot.slane %v430_v51, %v1947_v19  ;;  %v428_v57 = vrot.slane %v414_v52, %v1947_v19 }
  0xb5   : > { %481 = vxpose.xlu0.b32.start.end [1/1] (short) (narrow) %v385_v34, 16  ;;  %v409_v36 = vcombine.high %v385_v34, %v1863_v35  ;;  %v410_v43 = vcombine.high %v392_v39, %v1863_v35  ;;  %v411_v48 = vcombine.high %v401_v44, %v1863_v35 }
  0xb6   : > { %v445_v50 = vcombine.low %v421_v47, %v437_v46  ;;  %v412_v53 = vcombine.high %v408_v49, %v1863_v35  ;;  %v446_v55 = vcombine.high %v421_v47, %v437_v46  ;;  %v461_v60 = vcombine.low %v428_v57, %v444_v56 }
  0xb7   : > { %513 = vxpose.xlu1.b32.start.end [1/1] (short) (narrow) %v409_v36, 16  ;;  %v462_v63 = vcombine.high %v428_v57, %v444_v56 }
  0xb8   : > { %v453_v54 = vrot.slane %v445_v50, %v1951_v29  ;;  %v460_v59 = vrot.slane %v446_v55, %v1951_v29  ;;  %v469_v62 = vrot.slane %v461_v60, %v1951_v29 }
  0xb9   : > { %v476_v1 = vrot.slane %v462_v63, %v1951_v29 }
  0xba   : > { %545 = vxpose.xlu0.b32.start.end [1/1] (short) (narrow) %v392_v39, 16  ;;  %v477_v58 = vcombine.high %v453_v54, %v1863_v35  ;;  %v478_v61 = vcombine.high %v460_v59, %v1863_v35  ;;  %v479_v0 = vcombine.high %v469_v62, %v1863_v35 }
  0xbb   : > { %v480_v2 = vcombine.high %v476_v1, %v1863_v35 }
  0xbc   : > { %577 = vxpose.xlu1.b32.start.end [1/1] (short) (narrow) %v410_v43, 16 }
  0xbf   : > { %609 = vxpose.xlu0.b32.start.end [1/1] (short) (narrow) %v401_v44, 16 }
  0xc1   : > { %641 = vxpose.xlu1.b32.start.end [1/1] (short) (narrow) %v411_v48, 16 }
  0xc4   : > { %673 = vxpose.xlu0.b32.start.end [1/1] (short) (narrow) %v408_v49, 16 }
  0xc6   : > { %705 = vxpose.xlu1.b32.start.end [1/1] (short) (narrow) %v412_v53, 16 }
  0xc9   : > { %737 = vxpose.xlu0.b32.start.end [1/1] (short) (narrow) %v453_v54, 16 }
  0xcb   : > { %769 = vxpose.xlu1.b32.start.end [1/1] (short) (narrow) %v477_v58, 16 }
  0xce   : > { %801 = vxpose.xlu0.b32.start.end [1/1] (short) (narrow) %v460_v59, 16 }
  0xd0   : > { %833 = vxpose.xlu1.b32.start.end [1/1] (short) (narrow) %v478_v61, 16 }
  0xd3   : > { %865 = vxpose.xlu0.b32.start.end [1/1] (short) (narrow) %v469_v62, 16 }
  0xd5   : > { %897 = vxpose.xlu1.b32.start.end [1/1] (short) (narrow) %v479_v0, 16 }
  0xd8   : > { %929 = vxpose.xlu0.b32.start.end [1/1] (short) (narrow) %v476_v1, 16 }
  0xda   : > { %961 = vxpose.xlu1.b32.start.end [1/1] (short) (narrow) %v480_v2, 16 }
 0x131   : > { %v497_v3 = vpop.trf.xlu0 }
 0x133   : > { %v529_v4 = vpop.trf.xlu1 }
 0x135   : > { %v498_v5 = vpop.trf.xlu0 }
 0x137   : > { %v530_v6 = vpop.trf.xlu1 }
 0x139   : > { %v561_v7 = vpop.trf.xlu0 }
 0x13a   : > { %v993_v14 = vcombine.low %v497_v3, %v561_v7  ;;  %v994_v15 = vcombine.high %v497_v3, %v561_v7 }
 0x13b   : > { %v593_v8 = vpop.trf.xlu1 }
 0x13c   : > { %v1009_v11 = vcombine.low %v529_v4, %v593_v8  ;;  %v1010_v12 = vcombine.high %v529_v4, %v593_v8  ;;  %v1001_v21 = vrot.slane %v993_v14, %v1947_v19  ;;  %v1008_v22 = vrot.slane %v994_v15, %v1947_v19 }
 0x13d   : > { %v562_v9 = vpop.trf.xlu0 }
 0x13e   : > { %v1017_v17 = vrot.slane %v1009_v11, %v1947_v19  ;;  %v1024_v18 = vrot.slane %v1010_v12, %v1947_v19  ;;  %v1265_v23 = vcombine.low %v498_v5, %v562_v9  ;;  %v1266_v27 = vcombine.high %v498_v5, %v562_v9 }
 0x13f   : > { %v594_v10 = vpop.trf.xlu1 }
 0x140   : > { %v1281_v24 = vcombine.low %v530_v6, %v594_v10  ;;  %v1057_v26 = vcombine.low %v1001_v21, %v1017_v17  ;;  %v1058_v28 = vcombine.high %v1001_v21, %v1017_v17  ;;  %v1073_v30 = vcombine.low %v1008_v22, %v1024_v18 }
 0x141   : > { %v625_v13 = vpop.trf.xlu0  ;;  %v1074_v31 = vcombine.high %v1008_v22, %v1024_v18  ;;  %v1282_v32 = vcombine.high %v530_v6, %v594_v10  ;;  %v1273_v36 = vrot.slane %v1265_v23, %v1947_v19  ;;  %v1976_v40 = vrot.slane %v1266_v27, %v1947_v19 }
 0x142   : > { %v1289_v37 = vrot.slane %v1281_v24, %v1947_v19  ;;  %v1065_v39 = vrot.slane %v1057_v26, %v1951_v29  ;;  %v1072_v43 = vrot.slane %v1058_v28, %v1951_v29  ;;  %v1081_v44 = vrot.slane %v1073_v30, %v1951_v29 }
 0x143   : > { %v657_v16 = vpop.trf.xlu1  ;;  %v1088_v45 = vrot.slane %v1074_v31, %v1951_v29  ;;  %v1296_v46 = vrot.slane %v1282_v32, %v1947_v19 }
 0x144   : > { %v1329_v52 = vcombine.low %v1273_v36, %v1289_v37  ;;  %v1330_v53 = vcombine.high %v1273_v36, %v1289_v37 }
 0x145   : > { %v626_v20 = vpop.trf.xlu0  ;;  %v1345_v61 = vcombine.low %v1976_v40, %v1296_v46  ;;  %v1346_v62 = vcombine.high %v1976_v40, %v1296_v46 }
 0x146   : > { %v1344_v26 = vrot.slane %v1330_v53, %v1951_v29 }
 0x147   : > { %v658_v25 = vpop.trf.xlu1 }
 0x149   : > { %v689_v33 = vpop.trf.xlu0 }
 0x14a   : > { %v1025_v34 = vcombine.low %v625_v13, %v689_v33  ;;  %v1026_v35 = vcombine.high %v625_v13, %v689_v33  ;;  %v1353_v33 = vrot.slane %v1345_v61, %v1951_v29 }
 0x14b   : > { %v721_v38 = vpop.trf.xlu1 }
 0x14c   : > { %v1041_v41 = vcombine.low %v657_v16, %v721_v38  ;;  %v1042_v42 = vcombine.high %v657_v16, %v721_v38  ;;  %v1033_v48 = vrot.slane %v1025_v34, %v1947_v19  ;;  %v1040_v49 = vrot.slane %v1026_v35, %v1947_v19 }
 0x14d   : > { %v690_v47 = vpop.trf.xlu0  ;;  %v1360_v34 = vrot.slane %v1346_v62, %v1951_v29 }
 0x14e   : > { %v1049_v50 = vrot.slane %v1041_v41, %v1947_v19  ;;  %v1056_v51 = vrot.slane %v1042_v42, %v1947_v19  ;;  %v1297_v54 = vcombine.low %v626_v20, %v690_v47  ;;  %v1298_v55 = vcombine.high %v626_v20, %v690_v47 }
 0x14f   : > { %v722_v56 = vpop.trf.xlu1 }
 0x150   : > { %v1089_v57 = vcombine.low %v1033_v48, %v1049_v50  ;;  %v1090_v58 = vcombine.high %v1033_v48, %v1049_v50  ;;  %v1105_v59 = vcombine.low %v1040_v49, %v1056_v51  ;;  %v1106_v60 = vcombine.high %v1040_v49, %v1056_v51 }
 0x151   : > { %v1313_v63 = vcombine.low %v658_v25, %v722_v56  ;;  %v1314_v0 = vcombine.high %v658_v25, %v722_v56  ;;  %v1994_v1 = vpop.trf.xlu0  ;;  %v1305_v6 = vrot.slane %v1297_v54, %v1947_v19  ;;  %v1312_v7 = vrot.slane %v1298_v55, %v1947_v19 }
 0x152   : > { %v1097_v2 = vrot.slane %v1089_v57, %v1951_v29  ;;  %v1104_v3 = vrot.slane %v1090_v58, %v1951_v29  ;;  %v1113_v4 = vrot.slane %v1105_v59, %v1951_v29  ;;  %v1120_v5 = vrot.slane %v1106_v60, %v1951_v29 }
 0x153   : > { %v1321_v8 = vrot.slane %v1313_v63, %v1947_v19  ;;  %v1328_v9 = vrot.slane %v1314_v0, %v1947_v19  ;;  %v785_v10 = vpop.trf.xlu1  ;;  %v1337_v25 = vrot.slane %v1329_v52, %v1951_v29 }
 0x154   : > { %v1121_v11 = vcombine.low %v1065_v39, %v1097_v2  ;;  %v1122_v12 = vcombine.high %v1065_v39, %v1097_v2  ;;  %v1123_v13 = vcombine.low %v1072_v43, %v1104_v3  ;;  %v1124_v14 = vcombine.high %v1072_v43, %v1104_v3 }
 0x155   : > { %v1125_v15 = vcombine.low %v1081_v44, %v1113_v4  ;;  %v1126_v16 = vcombine.high %v1081_v44, %v1113_v4  ;;  %v1127_v17 = vcombine.low %v1088_v45, %v1120_v5  ;;  %v1128_v18 = vcombine.high %v1088_v45, %v1120_v5  ;;  %v2009_v20 = vpop.trf.xlu0 }
 0x156   : > { %1538 = vst.msk [vmem:[%s2003_s19] sm:$0xff] %vm1537_vm0, %v1121_v11  ;;  %1540 = vst.msk [vmem:[%s2003_s19 + $0x10] sm:$0xff] %vm1537_vm0, %v1122_v12  ;;  %v1361_v21 = vcombine.low %v1305_v6, %v1321_v8  ;;  %v1362_v22 = vcombine.high %v1305_v6, %v1321_v8  ;;  %v1377_v23 = vcombine.low %v1312_v7, %v1328_v9 }
 0x157   : > { %1542 = vst.msk [vmem:[%s2003_s19 + $0x20] sm:$0xff] %vm1537_vm0, %v1123_v13  ;;  %1544 = vst.msk [vmem:[%s2003_s19 + $0x30] sm:$0xff] %vm1537_vm0, %v1124_v14  ;;  %v1378_v24 = vcombine.high %v1312_v7, %v1328_v9  ;;  %v786_v27 = vpop.trf.xlu1 }
 0x158   : > { %1546 = vst.msk [vmem:[%s2003_s19 + $0x40] sm:$0xff] %vm1537_vm0, %v1125_v15  ;;  %1548 = vst.msk [vmem:[%s2003_s19 + $0x50] sm:$0xff] %vm1537_vm0, %v1126_v16  ;;  %v1369_v28 = vrot.slane %v1361_v21, %v1951_v29  ;;  %v1376_v30 = vrot.slane %v1362_v22, %v1951_v29  ;;  %v1385_v31 = vrot.slane %v1377_v23, %v1951_v29 }
 0x159   : > { %1550 = vst.msk [vmem:[%s2003_s19 + $0x60] sm:$0xff] %vm1537_vm0, %v1127_v17  ;;  %1552 = vst.msk [vmem:[%s2003_s19 + $0x70] sm:$0xff] %vm1537_vm0, %v1128_v18  ;;  %v1392_v32 = vrot.slane %v1378_v24, %v1951_v29  ;;  %v817_v35 = vpop.trf.xlu0 }
 0x15a   : > { %v1393_v36 = vcombine.low %v1337_v25, %v1369_v28  ;;  %v1394_v37 = vcombine.high %v1337_v25, %v1369_v28  ;;  %v1395_v38 = vcombine.low %v1344_v26, %v1376_v30  ;;  %v1396_v39 = vcombine.high %v1344_v26, %v1376_v30 }
 0x15b   : > { %v1397_v40 = vcombine.low %v1353_v33, %v1385_v31  ;;  %v1398_v41 = vcombine.high %v1353_v33, %v1385_v31  ;;  %v1399_v42 = vcombine.low %v1360_v34, %v1392_v32  ;;  %v1400_v43 = vcombine.high %v1360_v34, %v1392_v32  ;;  %v849_v44 = vpop.trf.xlu1 }
 0x15c   : > { %1554 = vst.msk [vmem:[%s2003_s19 + $0x80] sm:$0xff] %vm1537_vm0, %v1393_v36  ;;  %1556 = vst.msk [vmem:[%s2003_s19 + $0x90] sm:$0xff] %vm1537_vm0, %v1394_v37  ;;  %v1145_v47 = vcombine.low %v785_v10, %v849_v44  ;;  %v1146_v48 = vcombine.high %v785_v10, %v849_v44  ;;  %v1129_v50 = vcombine.low %v1994_v1, %v817_v35 }
 0x15d   : > { %1558 = vst.msk [vmem:[%s2003_s19 + $0xa0] sm:$0xff] %vm1537_vm0, %v1395_v38  ;;  %1560 = vst.msk [vmem:[%s2003_s19 + $0xb0] sm:$0xff] %vm1537_vm0, %v1396_v39  ;;  %v818_v45 = vpop.trf.xlu0  ;;  %v1130_v51 = vcombine.high %v1994_v1, %v817_v35 }
 0x15e   : > { %1562 = vst.msk [vmem:[%s2003_s19 + $0xc0] sm:$0xff] %vm1537_vm0, %v1397_v40  ;;  %1564 = vst.msk [vmem:[%s2003_s19 + $0xd0] sm:$0xff] %vm1537_vm0, %v1398_v41  ;;  %v1153_v53 = vrot.slane %v1145_v47, %v1947_v19  ;;  %v1160_v54 = vrot.slane %v1146_v48, %v1947_v19  ;;  %v1137_v56 = vrot.slane %v1129_v50, %v1947_v19 }
 0x15f   : > { %1566 = vst.msk [vmem:[%s2003_s19 + $0xe0] sm:$0xff] %vm1537_vm0, %v1399_v42  ;;  %1568 = vst.msk [vmem:[%s2003_s19 + $0xf0] sm:$0xff] %vm1537_vm0, %v1400_v43  ;;  %v850_v46 = vpop.trf.xlu1  ;;  %v1144_v57 = vrot.slane %v1130_v51, %v1947_v19  ;;  %v1401_v58 = vcombine.low %v2009_v20, %v818_v45  ;;  %v1402_v62 = vcombine.high %v2009_v20, %v818_v45 }
 0x160   : > { %v1417_v59 = vcombine.low %v786_v27, %v850_v46  ;;  %v1193_v61 = vcombine.low %v1137_v56, %v1153_v53  ;;  %v1194_v63 = vcombine.high %v1137_v56, %v1153_v53  ;;  %v1418_v2 = vcombine.high %v786_v27, %v850_v46 }
 0x161   : > { %v881_v49 = vpop.trf.xlu0  ;;  %v1209_v0 = vcombine.low %v1144_v57, %v1160_v54  ;;  %v1210_v1 = vcombine.high %v1144_v57, %v1160_v54  ;;  %v1409_v6 = vrot.slane %v1401_v58, %v1947_v19  ;;  %v1416_v10 = vrot.slane %v1402_v62, %v1947_v19 }
 0x162   : > { %v1425_v7 = vrot.slane %v1417_v59, %v1947_v19  ;;  %v1201_v9 = vrot.slane %v1193_v61, %v1951_v29  ;;  %v1208_v13 = vrot.slane %v1194_v63, %v1951_v29  ;;  %v1432_v16 = vrot.slane %v1418_v2, %v1947_v19 }
 0x163   : > { %v913_v52 = vpop.trf.xlu1  ;;  %v1217_v14 = vrot.slane %v1209_v0, %v1951_v29  ;;  %v1224_v15 = vrot.slane %v1210_v1, %v1951_v29 }
 0x164   : > { %v1465_v23 = vcombine.low %v1409_v6, %v1425_v7  ;;  %v1466_v24 = vcombine.high %v1409_v6, %v1425_v7  ;;  %v1481_v33 = vcombine.low %v1416_v10, %v1432_v16  ;;  %v1482_v34 = vcombine.high %v1416_v10, %v1432_v16 }
 0x165   : > { %v882_v55 = vpop.trf.xlu0 }
 0x166   : > { %v1473_v56 = vrot.slane %v1465_v23, %v1951_v29  ;;  %v1480_v57 = vrot.slane %v1466_v24, %v1951_v29  ;;  %v1489_v62 = vrot.slane %v1481_v33, %v1951_v29  ;;  %v1496_v63 = vrot.slane %v1482_v34, %v1951_v29 }
 0x167   : > { %v914_v60 = vpop.trf.xlu1 }
 0x169   : > { %v945_v3 = vpop.trf.xlu0 }
 0x16a   : > { %v1161_v4 = vcombine.low %v881_v49, %v945_v3  ;;  %v1162_v5 = vcombine.high %v881_v49, %v945_v3 }
 0x16b   : > { %v977_v8 = vpop.trf.xlu1 }
 0x16c   : > { %v1177_v11 = vcombine.low %v913_v52, %v977_v8  ;;  %v1178_v12 = vcombine.high %v913_v52, %v977_v8  ;;  %v1169_v18 = vrot.slane %v1161_v4, %v1947_v19  ;;  %v1176_v20 = vrot.slane %v1162_v5, %v1947_v19 }
 0x16d   : > { %v946_v17 = vpop.trf.xlu0 }
 0x16e   : > { %v1185_v21 = vrot.slane %v1177_v11, %v1947_v19  ;;  %v1192_v22 = vrot.slane %v1178_v12, %v1947_v19  ;;  %v1433_v25 = vcombine.low %v882_v55, %v946_v17  ;;  %v1434_v26 = vcombine.high %v882_v55, %v946_v17 }
 0x16f   : > { %v978_v27 = vpop.trf.xlu1 }
 0x170   : > { %v1225_v28 = vcombine.low %v1169_v18, %v1185_v21  ;;  %v1226_v30 = vcombine.high %v1169_v18, %v1185_v21  ;;  %v1241_v31 = vcombine.low %v1176_v20, %v1192_v22  ;;  %v1242_v32 = vcombine.high %v1176_v20, %v1192_v22 }
 0x171   : > { %v1449_v35 = vcombine.low %v914_v60, %v978_v27  ;;  %v1450_v36 = vcombine.high %v914_v60, %v978_v27  ;;  %v1441_v41 = vrot.slane %v1433_v25, %v1947_v19  ;;  %v1448_v42 = vrot.slane %v1434_v26, %v1947_v19 }
 0x172   : > { %v1233_v37 = vrot.slane %v1225_v28, %v1951_v29  ;;  %v1240_v38 = vrot.slane %v1226_v30, %v1951_v29  ;;  %v1249_v39 = vrot.slane %v1241_v31, %v1951_v29  ;;  %v1256_v40 = vrot.slane %v1242_v32, %v1951_v29 }
 0x173   : > { %v1457_v43 = vrot.slane %v1449_v35, %v1947_v19  ;;  %v1464_v44 = vrot.slane %v1450_v36, %v1947_v19 }
 0x174   : > { %v1257_v45 = vcombine.low %v1201_v9, %v1233_v37  ;;  %v1258_v46 = vcombine.high %v1201_v9, %v1233_v37  ;;  %v1259_v47 = vcombine.low %v1208_v13, %v1240_v38  ;;  %v1260_v48 = vcombine.high %v1208_v13, %v1240_v38 }
 0x175   : > { %v1261_v49 = vcombine.low %v1217_v14, %v1249_v39  ;;  %v1262_v50 = vcombine.high %v1217_v14, %v1249_v39  ;;  %v1263_v51 = vcombine.low %v1224_v15, %v1256_v40  ;;  %v1264_v52 = vcombine.high %v1224_v15, %v1256_v40 }
 0x176   : > { %1539 = vst.msk [vmem:[%s2003_s19 + $0x8] sm:$0xff] %vm1537_vm0, %v1257_v45  ;;  %1541 = vst.msk [vmem:[%s2003_s19 + $0x18] sm:$0xff] %vm1537_vm0, %v1258_v46  ;;  %v1497_v19 = vcombine.low %v1441_v41, %v1457_v43  ;;  %v1498_v53 = vcombine.high %v1441_v41, %v1457_v43  ;;  %v1513_v54 = vcombine.low %v1448_v42, %v1464_v44 }
 0x177   : > { %1543 = vst.msk [vmem:[%s2003_s19 + $0x28] sm:$0xff] %vm1537_vm0, %v1259_v47  ;;  %1545 = vst.msk [vmem:[%s2003_s19 + $0x38] sm:$0xff] %vm1537_vm0, %v1260_v48  ;;  %v1514_v55 = vcombine.high %v1448_v42, %v1464_v44 }
 0x178   : > { %1547 = vst.msk [vmem:[%s2003_s19 + $0x48] sm:$0xff] %vm1537_vm0, %v1261_v49  ;;  %1549 = vst.msk [vmem:[%s2003_s19 + $0x58] sm:$0xff] %vm1537_vm0, %v1262_v50  ;;  %v1505_v58 = vrot.slane %v1497_v19, %v1951_v29  ;;  %v1512_v59 = vrot.slane %v1498_v53, %v1951_v29  ;;  %v1521_v60 = vrot.slane %v1513_v54, %v1951_v29 }
 0x179   : > { %1551 = vst.msk [vmem:[%s2003_s19 + $0x68] sm:$0xff] %vm1537_vm0, %v1263_v51  ;;  %1553 = vst.msk [vmem:[%s2003_s19 + $0x78] sm:$0xff] %vm1537_vm0, %v1264_v52  ;;  %v1528_v61 = vrot.slane %v1514_v55, %v1951_v29 }
 0x17a   : > { %v1529_v0 = vcombine.low %v1473_v56, %v1505_v58  ;;  %v1530_v1 = vcombine.high %v1473_v56, %v1505_v58  ;;  %v1531_v2 = vcombine.low %v1480_v57, %v1512_v59  ;;  %v1532_v3 = vcombine.high %v1480_v57, %v1512_v59 }
 0x17b   : > { %v1533_v4 = vcombine.low %v1489_v62, %v1521_v60  ;;  %v1534_v5 = vcombine.high %v1489_v62, %v1521_v60  ;;  %v1535_v6 = vcombine.low %v1496_v63, %v1528_v61  ;;  %v1536_v7 = vcombine.high %v1496_v63, %v1528_v61 }
 0x17c   : > { %1555 = vst.msk [vmem:[%s2003_s19 + $0x88] sm:$0xff] %vm1537_vm0, %v1529_v0  ;;  %1557 = vst.msk [vmem:[%s2003_s19 + $0x98] sm:$0xff] %vm1537_vm0, %v1530_v1 }
 0x17d   : > { %1559 = vst.msk [vmem:[%s2003_s19 + $0xa8] sm:$0xff] %vm1537_vm0, %v1531_v2  ;;  %1561 = vst.msk [vmem:[%s2003_s19 + $0xb8] sm:$0xff] %vm1537_vm0, %v1532_v3 }
 0x17e   : > { %1563 = vst.msk [vmem:[%s2003_s19 + $0xc8] sm:$0xff] %vm1537_vm0, %v1533_v4  ;;  %1565 = vst.msk [vmem:[%s2003_s19 + $0xd8] sm:$0xff] %vm1537_vm0, %v1534_v5 }
 0x17f   : > { %1567 = vst.msk [vmem:[%s2003_s19 + $0xe8] sm:$0xff] %vm1537_vm0, %v1535_v6  ;;  %1569 = vst.msk [vmem:[%s2003_s19 + $0xf8] sm:$0xff] %vm1537_vm0, %v1536_v7 }
 0x180 PF: > { %s14_s11 = sadd.s32 1, %s1856_s11   ;;  %s2142_s6 = smov %s1840_s7 }
 0x181   : > { %p11_p8 = scmp.ge.s32.totalorder %s14_s11, 4   ;;  %s2143_s7 = smov %s1844_s8 }
 0x182   : > { %s2144_s8 = smov %s1923_s18  ;;  %s2145_s9 = smov %s1852_s10 }
 0x183   : > { %s2146_s10 = smov %s2148_s13  ;;  %13 = sbr.rel (!%p11_p8) target bundleno = 4 (0x4), region = 64 }
 0x188   :  { %1617 = vsyncpa [#allocation3], 1 }
 0x189   :  { %1619 = vsyncpa [#allocation3 + $0x1], 1 }

</bundles_post_ra>
